<compile_context>
chip_gen: v5e
topology: v5e:2x2
jax: 0.10.0
libtpu: 0.0.40
codegen_flags: <defaults>
</compile_context>

<pallas_src>
import functools
import math

import jax
import jax.numpy as jnp
from jax.experimental import pallas as pl
from jax.experimental.pallas import tpu as pltpu


_VMEM_LIMIT_BYTES = 48 * 1024 * 1024   # explicit scoped-VMEM request (< v7x 64 MiB)
_TILE_BUDGET_BYTES = 2 * 1024 * 1024   # ~2 MiB of (unpadded) input per grid step


def _round_up(x, m):
    return ((x + m - 1) // m) * m


def _sublane_min(dtype):
    # minimum second-to-last tile dim: 8 (f32), 16 (bf16), 32 (int8/fp8)
    return {4: 8, 2: 16, 1: 32}.get(jnp.dtype(dtype).itemsize, 8)


def _cost(numel, itemsize):
    # LayerNorm is pure HBM bandwidth: ~2 passes over the data, ~9 flop/elem.
    return pl.CostEstimate(flops=9 * numel, transcendentals=0,
                           bytes_accessed=2 * numel * itemsize)


# ---------------------------------------------------------------------------
# channels_first:  x is (N, C, H, W); normalize over C per pixel.
# Kernel tile is (nb, C, T): spatial on lanes (dense), C on sublanes (reduce).
# ---------------------------------------------------------------------------
def _ln_cf_kernel(x_ref, w_ref, b_ref, o_ref, *, eps, inv_c):
    x = x_ref[...].astype(jnp.float32)                 # (nb, C, T)
    sx = jnp.sum(x, axis=1, keepdims=True)             # (nb, 1, T)  one pass
    sx2 = jnp.sum(x * x, axis=1, keepdims=True)        # (nb, 1, T)
    mean = sx * inv_c
    var = jnp.maximum(sx2 * inv_c - mean * mean, 0.0)  # biased variance
    inv = jax.lax.rsqrt(var + eps)                     # EUP rsqrt
    w = w_ref[...].astype(jnp.float32)                 # (1, C, 1)
    b = b_ref[...].astype(jnp.float32)                 # (1, C, 1)
    o_ref[...] = ((x - mean) * inv * w + b).astype(o_ref.dtype)


def _pick_cf_tiles(n, c, hw, dtype, budget=_TILE_BUDGET_BYTES):
    """Pick (nb images per step, spatial lanes per step) from a VMEM budget."""
    itemsize = jnp.dtype(dtype).itemsize
    c_pad = _round_up(max(c, 1), _sublane_min(dtype))       # sublane padding of C
    lane_cap = max(128, (budget // (c_pad * itemsize)) // 128 * 128)
    if hw > lane_cap:
        # Big images: tile the spatial axis; cdiv grid handles a masked tail.
        return 1, lane_cap
    # Small images: take the full spatial extent and pack several batch
    # images per step so each step still moves ~budget bytes.
    per_img = c_pad * _round_up(hw, 128) * itemsize
    nb_cap = max(1, min(n, budget // max(per_img, 1)))
    nb = 1
    for d in range(nb_cap, 0, -1):                          # largest divisor of n
        if n % d == 0:
            nb = d
            break
    return nb, hw


def layer_norm_channels_first(x_nchw, weight, bias, *, eps=1e-6):
    """LayerNorm(data_format='channels_first') on an NCHW tensor."""
    N, C, H, W = x_nchw.shape
    HW = H * W
    x3 = x_nchw.reshape(N, C, HW)              # free reshape; spatial -> lanes
    nb, tsp = _pick_cf_tiles(N, C, HW, x_nchw.dtype)
    w3 = weight.reshape(1, C, 1)
    b3 = bias.reshape(1, C, 1)

    grid = (pl.cdiv(N, nb), pl.cdiv(HW, tsp))
    numel = N * C * HW
    itemsize = jnp.dtype(x_nchw.dtype).itemsize

    out = pl.pallas_call(
        functools.partial(_ln_cf_kernel, eps=eps, inv_c=1.0 / C),
        out_shape=jax.ShapeDtypeStruct((N, C, HW), x_nchw.dtype),
        grid_spec=pltpu.PrefetchScalarGridSpec(
            num_scalar_prefetch=0,
            grid=grid,
            in_specs=[
                pl.BlockSpec((nb, C, tsp), lambda n, s: (n, 0, s)),
                pl.BlockSpec((1, C, 1), lambda n, s: (0, 0, 0)),
                pl.BlockSpec((1, C, 1), lambda n, s: (0, 0, 0)),
            ],
            out_specs=pl.BlockSpec((nb, C, tsp), lambda n, s: (n, 0, s)),
        ),
        compiler_params=pltpu.CompilerParams(
            dimension_semantics=("parallel", "parallel"),
            vmem_limit_bytes=_VMEM_LIMIT_BYTES),
        cost_estimate=_cost(numel, itemsize),
    )(x3, w3, b3)
    return out.reshape(N, C, H, W)


# ---------------------------------------------------------------------------
# channels_last:  x is (..., C); normalize over the last dim (F.layer_norm).
# Small C: lane-dense packed path.  Large C: plain (tm, C) row tiles.
# ---------------------------------------------------------------------------
def _ln_cl_packed_kernel(x_ref, w_ref, b_ref, o_ref, *, eps, c, g):
    x = x_ref[...].astype(jnp.float32)                 # (tm, g*c) lane-dense
    gc = g * c
    # Block-diagonal 0/1 segment matrices built from 2-D iotas (no big
    # constants, no integer division).  seg: (gc, g); seg_t: (g, gc).
    lane = jax.lax.broadcasted_iota(jnp.int32, (gc, g), 0)
    grp = jax.lax.broadcasted_iota(jnp.int32, (gc, g), 1)
    start = grp * c
    seg = jnp.logical_and(lane >= start, lane < start + c).astype(jnp.float32)
    lane_t = jax.lax.broadcasted_iota(jnp.int32, (g, gc), 1)
    grp_t = jax.lax.broadcasted_iota(jnp.int32, (g, gc), 0)
    start_t = grp_t * c
    seg_t = jnp.logical_and(lane_t >= start_t,
                            lane_t < start_t + c).astype(jnp.float32)

    inv_c = 1.0 / c
    # One-pass per-group statistics: the MXU does the segmented lane
    # reduction (f32 accumulate); seg_t broadcasts them back to every lane.
    sx = jnp.dot(x, seg, preferred_element_type=jnp.float32)        # (tm, g)
    sx2 = jnp.dot(x * x, seg, preferred_element_type=jnp.float32)   # (tm, g)
    mean = sx * inv_c
    var = jnp.maximum(sx2 * inv_c - mean * mean, 0.0)
    inv = jax.lax.rsqrt(var + eps)
    mean_b = jnp.dot(mean, seg_t, preferred_element_type=jnp.float32)  # (tm, gc)
    inv_b = jnp.dot(inv, seg_t, preferred_element_type=jnp.float32)    # (tm, gc)

    w = w_ref[...].astype(jnp.float32)                 # (1, gc)
    b = b_ref[...].astype(jnp.float32)
    o_ref[...] = ((x - mean_b) * inv_b * w + b).astype(o_ref.dtype)


def _ln_cl_kernel(x_ref, w_ref, b_ref, o_ref, *, eps, inv_c):
    x = x_ref[...].astype(jnp.float32)                 # (tm, C)
    sx = jnp.sum(x, axis=-1, keepdims=True)
    sx2 = jnp.sum(x * x, axis=-1, keepdims=True)
    mean = sx * inv_c
    var = jnp.maximum(sx2 * inv_c - mean * mean, 0.0)
    inv = jax.lax.rsqrt(var + eps)
    w = w_ref[...].astype(jnp.float32)                 # (1, C)
    b = b_ref[...].astype(jnp.float32)
    o_ref[...] = ((x - mean) * inv * w + b).astype(o_ref.dtype)


def _packed_width(c, rows_total):
    """Packed lane width (multiple of 128 and of C) for the small-C path."""
    if c >= 128:
        return None
    base = (c * 128) // math.gcd(c, 128)               # lcm(C, 128)
    if base > 1024:
        return None
    for mult in (4, 2, 1):
        wpack = base * mult
        if wpack > 1024:
            continue
        g = wpack // c
        if rows_total >= g and rows_total % g == 0:
            return wpack
    return None


def _pick_row_tile(rows, width, dtype, budget=_TILE_BUDGET_BYTES):
    """Row-tile size from a per-buffer VMEM budget, dtype-sublane aware."""
    itemsize = jnp.dtype(dtype).itemsize
    sub = _sublane_min(dtype)
    row_bytes = max(_round_up(width, 128), 128) * itemsize
    cap = max((budget // row_bytes) // sub * sub, sub)
    if rows <= cap:
        return rows                 # full extent is always a legal block dim
    return cap                      # multiple of sublane tile; cdiv grid handles tail


def layer_norm_channels_last(x, weight, bias, *, eps=1e-6):
    """LayerNorm(data_format='channels_last') on a (..., C) tensor."""
    C = x.shape[-1]
    lead = x.shape[:-1]
    R = math.prod(lead) if lead else 1
    dtype = x.dtype
    itemsize = jnp.dtype(dtype).itemsize
    numel = R * C

    wpack = _packed_width(C, R)
    if wpack is not None:
        # --- lane-dense packed path for small C ---
        G = wpack // C
        rows = R // G
        x2 = x.reshape(rows, wpack)                   # free contiguous reshape
        w2 = jnp.tile(weight.reshape(1, C), (1, G))   # per-group repeated params
        b2 = jnp.tile(bias.reshape(1, C), (1, G))
        tm = _pick_row_tile(rows, wpack, dtype)
        grid = (pl.cdiv(rows, tm),)
        out = pl.pallas_call(
            functools.partial(_ln_cl_packed_kernel, eps=eps, c=C, g=G),
            out_shape=jax.ShapeDtypeStruct((rows, wpack), dtype),
            grid_spec=pltpu.PrefetchScalarGridSpec(
                num_scalar_prefetch=0,
                grid=grid,
                in_specs=[
                    pl.BlockSpec((tm, wpack), lambda i: (i, 0)),
                    pl.BlockSpec((1, wpack), lambda i: (0, 0)),
                    pl.BlockSpec((1, wpack), lambda i: (0, 0)),
                ],
                out_specs=pl.BlockSpec((tm, wpack), lambda i: (i, 0)),
            ),
            compiler_params=pltpu.CompilerParams(
                dimension_semantics=("parallel",),
                vmem_limit_bytes=_VMEM_LIMIT_BYTES),
            cost_estimate=_cost(numel, itemsize),
        )(x2, w2, b2)
        return out.reshape(*lead, C)

    # --- general path: (tm, C) row tiles (lane-dense when C >= 128) ---
    x2 = x.reshape(R, C)
    w2 = weight.reshape(1, C)
    b2 = bias.reshape(1, C)
    tm = _pick_row_tile(R, C, dtype)
    grid = (pl.cdiv(R, tm),)
    out = pl.pallas_call(
        functools.partial(_ln_cl_kernel, eps=eps, inv_c=1.0 / C),
        out_shape=jax.ShapeDtypeStruct((R, C), dtype),
        grid_spec=pltpu.PrefetchScalarGridSpec(
            num_scalar_prefetch=0,
            grid=grid,
            in_specs=[
                pl.BlockSpec((tm, C), lambda i: (i, 0)),
                pl.BlockSpec((1, C), lambda i: (0, 0)),
                pl.BlockSpec((1, C), lambda i: (0, 0)),
            ],
            out_specs=pl.BlockSpec((tm, C), lambda i: (i, 0)),
        ),
        compiler_params=pltpu.CompilerParams(
            dimension_semantics=("parallel",),
            vmem_limit_bytes=_VMEM_LIMIT_BYTES),
        cost_estimate=_cost(numel, itemsize),
    )(x2, w2, b2)
    return out.reshape(*lead, C)


# ---------------------------------------------------------------------------
# plain-JAX references (mirror the PyTorch forward exactly)
# ---------------------------------------------------------------------------
def ln_cf_reference(x, w, b, eps):
    u = x.mean(axis=1, keepdims=True)
    s = ((x - u) ** 2).mean(axis=1, keepdims=True)
    y = (x - u) / jnp.sqrt(s + eps)
    return w[None, :, None, None] * y + b[None, :, None, None]


def ln_cl_reference(x, w, b, eps):
    u = x.mean(axis=-1, keepdims=True)
    s = ((x - u) ** 2).mean(axis=-1, keepdims=True)
    y = (x - u) / jnp.sqrt(s + eps)
    return y * w + b


if __name__ == "__main__":
    key = jax.random.PRNGKey(0)
    k_x, k_w, k_b, k_x2, k_w2, k_b2 = jax.random.split(key, 6)

    # --- channels_first (NCHW): the module's main use in srarnv3 ---
    N, C, H, W = 2, 4, 16, 16
    eps = 1e-6
    x = jax.random.normal(k_x, (N, C, H, W), dtype=jnp.float32)
    weight = 1.0 + 0.1 * jax.random.normal(k_w, (C,), dtype=jnp.float32)
    bias = 0.1 * jax.random.normal(k_b, (C,), dtype=jnp.float32)

    out_cf = jax.block_until_ready(
        layer_norm_channels_first(x, weight, bias, eps=eps))
    ref_cf = ln_cf_reference(x, weight, bias, eps)
    assert out_cf.shape == (N, C, H, W)
    assert jnp.allclose(out_cf, ref_cf, atol=1e-4, rtol=1e-4), \
        "channels_first mismatch vs reference"

    # --- channels_last, small C (lane-dense packed path) ---
    x_nhwc = jnp.transpose(x, (0, 2, 3, 1))
    out_cl = jax.block_until_ready(
        layer_norm_channels_last(x_nhwc, weight, bias, eps=eps))
    ref_cl = ln_cl_reference(x_nhwc, weight, bias, eps)
    assert out_cl.shape == (N, H, W, C)
    # The per-group reduction runs on the MXU (f32 accumulate; typical error
    # < 1e-5); tolerance left with margin in case the backend ever picks a
    # lower contract precision for f32 operands.
    assert jnp.allclose(out_cl, ref_cl, atol=1e-2, rtol=1e-2), \
        "channels_last (packed) mismatch vs reference"

    # --- channels_last, C >= 128 (plain row-tile path) ---
    C2 = 128
    x_seq = jax.random.normal(k_x2, (2, 8, C2), dtype=jnp.float32)
    w_seq = 1.0 + 0.1 * jax.random.normal(k_w2, (C2,), dtype=jnp.float32)
    b_seq = 0.1 * jax.random.normal(k_b2, (C2,), dtype=jnp.float32)
    out_cl2 = jax.block_until_ready(
        layer_norm_channels_last(x_seq, w_seq, b_seq, eps=eps))
    ref_cl2 = ln_cl_reference(x_seq, w_seq, b_seq, eps)
    assert out_cl2.shape == (2, 8, C2)
    assert jnp.allclose(out_cl2, ref_cl2, atol=1e-4, rtol=1e-4), \
        "channels_last mismatch vs reference"

    print("KERNEL_OK")
</pallas_src>

<mosaic_0001>
module attributes {stable_mosaic.version = 11 : i64} {
  func.func @_ln_cf_kernel(%arg0: i32, %arg1: i32, %arg2: memref<2x4x256xf32, #tpu.memory_space<vmem>>, %arg3: memref<1x4x1xf32, #tpu.memory_space<vmem>>, %arg4: memref<1x4x1xf32, #tpu.memory_space<vmem>>, %arg5: memref<2x4x256xf32, #tpu.memory_space<vmem>>) attributes {dimension_semantics = [#tpu.dimension_semantics<parallel>, #tpu.dimension_semantics<parallel>], iteration_bounds = array<i64: 1, 1>, scalar_prefetch = 0 : i64, scratch_operands = 0 : i64, tpu.core_type = #tpu.core_type<tc>, window_params = [{transform_indices = @transform_0, window_bounds = array<i64: 2, 4, 256>}, {pipeline_mode = #tpu.pipeline_mode<synchronous>, transform_indices = @transform_1, window_bounds = array<i64: 1, 4, 1>}, {pipeline_mode = #tpu.pipeline_mode<synchronous>, transform_indices = @transform_2, window_bounds = array<i64: 1, 4, 1>}, {transform_indices = @transform_3, window_bounds = array<i64: 2, 4, 256>}]} {
    %c0 = arith.constant 0 : index
    %c0_0 = arith.constant 0 : index
    %c0_1 = arith.constant 0 : index
    %0 = vector.load %arg2[%c0, %c0_0, %c0_1] : memref<2x4x256xf32, #tpu.memory_space<vmem>>, vector<2x4x256xf32>
    %cst = arith.constant dense<0.000000e+00> : vector<2x256xf32>
    %1 = vector.multi_reduction <add>, %0, %cst [1] : vector<2x4x256xf32> to vector<2x256xf32>
    %2 = vector.shape_cast %1 : vector<2x256xf32> to vector<2x1x256xf32>
    %3 = arith.mulf %0, %0 : vector<2x4x256xf32>
    %cst_2 = arith.constant dense<0.000000e+00> : vector<2x256xf32>
    %4 = vector.multi_reduction <add>, %3, %cst_2 [1] : vector<2x4x256xf32> to vector<2x256xf32>
    %5 = vector.shape_cast %4 : vector<2x256xf32> to vector<2x1x256xf32>
    %cst_3 = arith.constant 2.500000e-01 : f32
    %6 = vector.broadcast %cst_3 : f32 to vector<2x1x256xf32>
    %7 = arith.mulf %2, %6 : vector<2x1x256xf32>
    %cst_4 = arith.constant 2.500000e-01 : f32
    %8 = vector.broadcast %cst_4 : f32 to vector<2x1x256xf32>
    %9 = arith.mulf %5, %8 : vector<2x1x256xf32>
    %10 = arith.mulf %7, %7 : vector<2x1x256xf32>
    %11 = arith.subf %9, %10 : vector<2x1x256xf32>
    %cst_5 = arith.constant 0.000000e+00 : f32
    %12 = vector.broadcast %cst_5 : f32 to vector<2x1x256xf32>
    %13 = arith.maximumf %11, %12 : vector<2x1x256xf32>
    %cst_6 = arith.constant 9.99999997E-7 : f32
    %14 = vector.broadcast %cst_6 : f32 to vector<2x1x256xf32>
    %15 = arith.addf %13, %14 : vector<2x1x256xf32>
    %16 = math.rsqrt %15 : vector<2x1x256xf32>
    %c0_7 = arith.constant 0 : index
    %c0_8 = arith.constant 0 : index
    %c0_9 = arith.constant 0 : index
    %17 = vector.load %arg3[%c0_7, %c0_8, %c0_9] : memref<1x4x1xf32, #tpu.memory_space<vmem>>, vector<1x4x1xf32>
    %c0_10 = arith.constant 0 : index
    %c0_11 = arith.constant 0 : index
    %c0_12 = arith.constant 0 : index
    %18 = vector.load %arg4[%c0_10, %c0_11, %c0_12] : memref<1x4x1xf32, #tpu.memory_space<vmem>>, vector<1x4x1xf32>
    %19 = vector.broadcast %7 : vector<2x1x256xf32> to vector<2x4x256xf32>
    %20 = arith.subf %0, %19 : vector<2x4x256xf32>
    %21 = vector.broadcast %16 : vector<2x1x256xf32> to vector<2x4x256xf32>
    %22 = arith.mulf %20, %21 : vector<2x4x256xf32>
    %23 = vector.broadcast %17 : vector<1x4x1xf32> to vector<2x4x256xf32>
    %24 = arith.mulf %22, %23 : vector<2x4x256xf32>
    %25 = vector.broadcast %18 : vector<1x4x1xf32> to vector<2x4x256xf32>
    %26 = arith.addf %24, %25 : vector<2x4x256xf32>
    %c0_13 = arith.constant 0 : index
    %c0_14 = arith.constant 0 : index
    %c0_15 = arith.constant 0 : index
    %27 = vector.load %arg5[%c0_13, %c0_14, %c0_15] : memref<2x4x256xf32, #tpu.memory_space<vmem>>, vector<2x4x256xf32>
    tpu.vector_store %arg5[%c0_13, %c0_14, %c0_15], %26 {strides = array<i32>} : memref<2x4x256xf32, #tpu.memory_space<vmem>>, vector<2x4x256xf32>,
    return
  }
  func.func @transform_0(%arg0: i32, %arg1: i32) -> (i32, i32, i32) {
    %c0_i32 = arith.constant 0 : i32
    %c0_i32_0 = arith.constant 0 : i32
    return %arg0, %c0_i32, %arg1 : i32, i32, i32
  }
  func.func @transform_1(%arg0: i32, %arg1: i32) -> (i32, i32, i32) {
    %c0_i32 = arith.constant 0 : i32
    %c0_i32_0 = arith.constant 0 : i32
    %c0_i32_1 = arith.constant 0 : i32
    %c0_i32_2 = arith.constant 0 : i32
    return %c0_i32, %c0_i32_0, %c0_i32_1 : i32, i32, i32
  }
  func.func @transform_2(%arg0: i32, %arg1: i32) -> (i32, i32, i32) {
    %c0_i32 = arith.constant 0 : i32
    %c0_i32_0 = arith.constant 0 : i32
    %c0_i32_1 = arith.constant 0 : i32
    %c0_i32_2 = arith.constant 0 : i32
    return %c0_i32, %c0_i32_0, %c0_i32_1 : i32, i32, i32
  }
  func.func @transform_3(%arg0: i32, %arg1: i32) -> (i32, i32, i32) {
    %c0_i32 = arith.constant 0 : i32
    %c0_i32_0 = arith.constant 0 : i32
    return %arg0, %c0_i32, %arg1 : i32, i32, i32
  }
}

</mosaic_0001>

<bundles_post_ra>
// kernel: tpu_custom_call.1
= control target key start
LH: loop header
LB: loop body
LE: loop exit
PB: predicated region body
PF: predicated region fallthrough
CT: control target
= control target key end

     0   :  { %8 = vsyncpa [#allocation3], 0  ;;  %s424_s0 = inlined_call_operand.hbm [shape: f32[2,4,256], index: 0, kind: input, shape index: {}]   ;;  %s425_s1 = inlined_call_operand.vmem [shape: f32[1,4,1], index: 1, kind: input, shape index: {}]   ;;  %s426_s2 = inlined_call_operand.vmem [shape: f32[1,4,1], index: 2, kind: input, shape index: {}]   ;;  %s427_s3 = inlined_call_operand.hbm [shape: f32[2,4,256], index: 3, kind: output, shape index: {}]  }
   0x1   :  { %9 = vsyncpa [#allocation4], 0  ;;  %s14_s14 = sshll.u32 %s424_s0, 4  ;;  %s318_s15 = smov [#allocation2]   ;;  %s15_s14 = int_to_ptr.hbm [resolvable:$true] %s14_s14 }
   0x2   :  { %s16_s16 = sshll.u32 %s318_s15, 4  ;;  %s319_s17 = smov 128   ;;  %s17_s16 = int_to_ptr.vmem [resolvable:$true] %s16_s16 }
   0x3   :  { %s320_s18 = smov 8  }
   0x4   :  { %22 = dma.hbm_to_vmem [thread:$0]  %s15_s14, 256, %s17_s16, [#allocation3], %s319_s17, %s319_s17, %s320_s18  }
   0x5   :  { %314 = dma.done.wait [#allocation3], 256  }
   0x6   :  { %315 = vsyncadd [#allocation3], 4294967040  ;;  %v321_v0 = vmov 0   ;;  %v182_v1 = vld [vmem:[%s425_s1] sm:$0xf]  ;;  %v356_v3 = vld [vmem:[#allocation2] sm:$0xff] }
   0x7   :  { %257 = vset.pattern.permute.xlu0 %v321_v0  ;;  %v183_v2 = vld [vmem:[%s426_s2] sm:$0xf]  ;;  %v358_v4 = vld [vmem:[#allocation2 + $0x8] sm:$0xff]  ;;  %35 = vst [vmem:[#allocation1] ss:$2 sm:$0xff] %v356_v3  ;;  %v75_v5 = vmul.f32 %v356_v3, %v356_v3  ;;  %vm46_vm0 = vcmask 1043456  }
   0x8   :  { %210 = vperm.xlu0 %257, %v182_v1   ;;  %39 = vst [vmem:[#allocation1 + $0x10] ss:$2 sm:$0xff] %v358_v4  ;;  %v76_v6 = vmul.f32 %v358_v4, %v358_v4  ;;  %s323_s1 = smov [#allocation5]   ;;  %s238_s24 = sshll.u32 %s427_s3, 4  ;;  %s239_s24 = int_to_ptr.hbm [resolvable:$true] %s238_s24 }
   0x9   :  { %s236_s2 = sshll.u32 %s323_s1, 4  ;;  %s237_s2 = int_to_ptr.vmem [resolvable:$true] %s236_s2 }
   0xe   :  { %v36_v7 = vld.sshfl [vmem:[#allocation1] sm:$0xff pattern:$0x75316420]  ;;  %v37_v8 = vld.sshfl [vmem:[#allocation1 + $0x8] sm:$0xff pattern:$0x75316420] }
   0xf   :  { %v40_v9 = vld.sshfl [vmem:[#allocation1 + $0x10] sm:$0xff pattern:$0x75316420]  ;;  %v41_v10 = vld.sshfl [vmem:[#allocation1 + $0x18] sm:$0xff pattern:$0x75316420] }
  0x10   :  { %221 = vperm.xlu0 %257, %v183_v2   ;;  %79 = vst [vmem:[#allocation1] ss:$2 sm:$0xff] %v75_v5  ;;  %v54_v11 = vsel %vm46_vm0, %v37_v8, 0.0  ;;  %v68_v12 = vsel %vm46_vm0, %v41_v10, 0.0  ;;  %v47_v15 = vsel %vm46_vm0, %v36_v7, 0.0  ;;  %v61_v16 = vsel %vm46_vm0, %v40_v9, 0.0 }
  0x11   :  { %83 = vst [vmem:[#allocation1 + $0x10] ss:$2 sm:$0xff] %v76_v6  ;;  %v55_v13 = vrot.slane %v54_v11, 4  ;;  %v69_v14 = vrot.slane %v68_v12, 4  ;;  %v48_v18 = vrot.slane %v47_v15, 4  ;;  %v62_v20 = vrot.slane %v61_v16, 4 }
  0x13   :  { %v56_v19 = vadd.f32 %v55_v13, %v54_v11  ;;  %v70_v21 = vadd.f32 %v69_v14, %v68_v12  ;;  %v49_v25 = vadd.f32 %v48_v18, %v47_v15  ;;  %v63_v27 = vadd.f32 %v62_v20, %v61_v16 }
  0x15   :  { %v57_v26 = vrot.slane %v56_v19, 2  ;;  %v71_v28 = vrot.slane %v70_v21, 2  ;;  %v50_v33 = vrot.slane %v49_v25, 2  ;;  %v64_v39 = vrot.slane %v63_v27, 2 }
  0x17   :  { %v81_v17 = vld.sshfl [vmem:[#allocation1 + $0x8] sm:$0xff pattern:$0x75316420]  ;;  %v80_v22 = vld.sshfl [vmem:[#allocation1] sm:$0xff pattern:$0x75316420]  ;;  %v58_v34 = vadd.f32 %v57_v26, %v56_v19  ;;  %v72_v40 = vadd.f32 %v71_v28, %v70_v21  ;;  %v51_v45 = vadd.f32 %v50_v33, %v49_v25  ;;  %v65_v50 = vadd.f32 %v64_v39, %v63_v27 }
  0x18   :  { %v84_v23 = vld.sshfl [vmem:[#allocation1 + $0x10] sm:$0xff pattern:$0x75316420]  ;;  %v85_v24 = vld.sshfl [vmem:[#allocation1 + $0x18] sm:$0xff pattern:$0x75316420] }
  0x19   :  { %v90_v29 = vsel %vm46_vm0, %v80_v22, 0.0  ;;  %v97_v30 = vsel %vm46_vm0, %v81_v17, 0.0  ;;  %v104_v31 = vsel %vm46_vm0, %v84_v23, 0.0  ;;  %v111_v32 = vsel %vm46_vm0, %v85_v24, 0.0 }
  0x1a   :  { %v91_v35 = vrot.slane %v90_v29, 4  ;;  %v98_v36 = vrot.slane %v97_v30, 4  ;;  %v105_v37 = vrot.slane %v104_v31, 4  ;;  %v112_v38 = vrot.slane %v111_v32, 4 }
  0x1b   :  { %v59_v46 = vrot.slane %v58_v34, 1  ;;  %v73_v51 = vrot.slane %v72_v40, 1  ;;  %v52_v55 = vrot.slane %v51_v45, 1  ;;  %v66_v59 = vrot.slane %v65_v50, 1 }
  0x1c   :  { %v92_v41 = vadd.f32 %v91_v35, %v90_v29  ;;  %v99_v42 = vadd.f32 %v98_v36, %v97_v30  ;;  %v106_v43 = vadd.f32 %v105_v37, %v104_v31  ;;  %v113_v44 = vadd.f32 %v112_v38, %v111_v32 }
  0x1d   :  { %v60_v56 = vadd.f32 %v59_v46, %v58_v34  ;;  %v74_v60 = vadd.f32 %v73_v51, %v72_v40  ;;  %v53_v63 = vadd.f32 %v52_v55, %v51_v45  ;;  %v67_v5 = vadd.f32 %v66_v59, %v65_v50 }
  0x1e   :  { %v93_v47 = vrot.slane %v92_v41, 2  ;;  %v100_v48 = vrot.slane %v99_v42, 2  ;;  %v114_v49 = vrot.slane %v113_v44, 2  ;;  %v107_v52 = vrot.slane %v106_v43, 2 }
  0x1f   :  { %v374_v2 = vmul.f32 0.25, %v60_v56  ;;  %v376_v8 = vmul.f32 0.25, %v74_v60  ;;  %v378_v10 = vmul.f32 0.25, %v53_v63  ;;  %v382_v14 = vmul.f32 0.25, %v67_v5 }
  0x20   :  { %v101_v53 = vadd.f32 %v100_v48, %v99_v42  ;;  %v115_v54 = vadd.f32 %v114_v49, %v113_v44  ;;  %v94_v57 = vadd.f32 %v93_v47, %v92_v41  ;;  %v108_v61 = vadd.f32 %v107_v52, %v106_v43 }
  0x21   :  { %v127_v12 = vmul.f32 %v374_v2, %v374_v2  ;;  %v129_v16 = vmul.f32 %v376_v8, %v376_v8  ;;  %v126_v18 = vmul.f32 %v378_v10, %v378_v10  ;;  %v128_v21 = vmul.f32 %v382_v14, %v382_v14 }
  0x22   :  { %v102_v58 = vrot.slane %v101_v53, 1  ;;  %v116_v62 = vrot.slane %v115_v54, 1  ;;  %v95_v0 = vrot.slane %v94_v57, 1  ;;  %v109_v6 = vrot.slane %v108_v61, 1 }
  0x24   :  { %v103_v1 = vadd.f32 %v102_v58, %v101_v53  ;;  %v117_v7 = vadd.f32 %v116_v62, %v115_v54  ;;  %v96_v9 = vadd.f32 %v95_v0, %v94_v57  ;;  %v110_v13 = vadd.f32 %v109_v6, %v108_v61 }
  0x25   :  { %v188_v57 = vrot.slane %v374_v2, 4  ;;  %v189_v58 = vrot.slane %v376_v8, 4  ;;  %v322_v0 = vmov 839922192  }
  0x26   :  { %v123_v11 = vmul.f32 0.25, %v103_v1  ;;  %v125_v15 = vmul.f32 0.25, %v117_v7  ;;  %v122_v17 = vmul.f32 0.25, %v96_v9  ;;  %v124_v20 = vmul.f32 0.25, %v110_v13 }
  0x27   :  { %v213_v1 = vunpack.c.l.s4 %v322_v0  ;;  %v190_v2 = vsel %vm46_vm0, %v378_v10, %v188_v57  ;;  %v191_v5 = vsel %vm46_vm0, %v382_v14, %v189_v58 }
  0x28   :  { %v131_v19 = vsub.f32 %v123_v11, %v127_v12  ;;  %v133_v22 = vsub.f32 %v125_v15, %v129_v16  ;;  %v130_v23 = vsub.f32 %v122_v17, %v126_v18  ;;  %v132_v25 = vsub.f32 %v124_v20, %v128_v21 }
  0x29   :  { %v214_v12 = vunpack.c.0.s8 %v213_v1  ;;  %v194_v13 = vsub.f32 %v356_v3, %v190_v2  ;;  %v195_v15 = vsub.f32 %v358_v4, %v191_v5 }
  0x2a   :  { %v135_v24 = vmax.f32 %v131_v19, 0.0  ;;  %v137_v26 = vmax.f32 %v133_v22, 0.0  ;;  %v134_v27 = vmax.f32 %v130_v23, 0.0  ;;  %v136_v29 = vmax.f32 %v132_v25, 0.0 }
  0x2c   :  { %v139_v28 = vadd.f32 1e-06, %v135_v24  ;;  %v141_v30 = vadd.f32 1e-06, %v137_v26  ;;  %v138_v31 = vadd.f32 1e-06, %v134_v27 }
  0x2d   :  { %v140_v32 = vadd.f32 1e-06, %v136_v29 }
  0x2e   :  { %258 = vrsqrt.f32 %v139_v28  ;;  %vm158_vm1 = vweird.f32 %v139_v28  ;;  %vm178_vm3 = vweird.f32 %v141_v30  ;;  %vm148_vm6 = vweird.f32 %v138_v31 }
  0x2f   :  { %260 = vrsqrt.f32 %v141_v30  ;;  %vm168_vm9 = vweird.f32 %v140_v32 }
  0x30   :  { %262 = vrsqrt.f32 %v138_v31 }
  0x31   :  { %264 = vrsqrt.f32 %v140_v32 }
  0x34   :  { %v259_v33 = vpop.eup %258 }
  0x35   :  { %v261_v34 = vpop.eup %260  ;;  %v153_v36 = vmul.f32 %v259_v33, %v139_v28  ;;  %vm159_vm2 = vweird.f32 %v259_v33 }
  0x36   :  { %v263_v35 = vpop.eup %262  ;;  %v173_v37 = vmul.f32 %v261_v34, %v141_v30  ;;  %vm179_vm4 = vweird.f32 %v261_v34  ;;  %vm390_vm5 = vmor %vm158_vm1, %vm159_vm2 }
  0x37   :  { %v265_v38 = vpop.eup %264  ;;  %v143_v39 = vmul.f32 %v263_v35, %v138_v31  ;;  %v154_v40 = vmul.f32 %v259_v33, %v153_v36  ;;  %vm149_vm7 = vweird.f32 %v263_v35  ;;  %vm394_vm8 = vmor %vm178_vm3, %vm179_vm4 }
  0x38   :  { %v163_v41 = vmul.f32 %v265_v38, %v140_v32  ;;  %v174_v42 = vmul.f32 %v261_v34, %v173_v37  ;;  %vm169_vm10 = vweird.f32 %v265_v38  ;;  %vm400_vm11 = vmor %vm148_vm6, %vm149_vm7 }
  0x39   :  { %v144_v43 = vmul.f32 %v263_v35, %v143_v39  ;;  %v155_v44 = vmul.f32 0.5, %v154_v40  ;;  %vm170_vm12 = vmor %vm168_vm9, %vm169_vm10 }
  0x3a   :  { %v164_v45 = vmul.f32 %v265_v38, %v163_v41  ;;  %v175_v46 = vmul.f32 0.5, %v174_v42 }
  0x3b   :  { %v145_v47 = vmul.f32 0.5, %v144_v43  ;;  %v156_v48 = vsub.f32 1.5, %v155_v44 }
  0x3c   :  { %v165_v49 = vmul.f32 0.5, %v164_v45  ;;  %v176_v50 = vsub.f32 1.5, %v175_v46 }
  0x3d   :  { %v146_v51 = vsub.f32 1.5, %v145_v47  ;;  %v157_v52 = vmul.f32 %v259_v33, %v156_v48 }
  0x3e   :  { %v166_v54 = vsub.f32 1.5, %v165_v49  ;;  %v177_v55 = vmul.f32 %v261_v34, %v176_v50 }
  0x3f   :  { %v147_v59 = vmul.f32 %v263_v35, %v146_v51  ;;  %v161_v61 = vsel %vm390_vm5, %v259_v33, %v157_v52 }
  0x40   :  { %v167_v62 = vmul.f32 %v265_v38, %v166_v54  ;;  %v181_v63 = vsel %vm394_vm8, %v261_v34, %v177_v55  ;;  %v200_v6 = vrot.slane %v161_v61, 4 }
  0x41   :  { %v201_v7 = vrot.slane %v181_v63, 4  ;;  %v151_v8 = vsel %vm400_vm11, %v263_v35, %v147_v59 }
  0x42   :  { %v171_v9 = vsel %vm170_vm12, %v265_v38, %v167_v62  ;;  %v202_v16 = vsel %vm46_vm0, %v151_v8, %v200_v6 }
  0x43   :  { %v203_v17 = vsel %vm46_vm0, %v171_v9, %v201_v7  ;;  %v206_v10 = vmul.f32 %v202_v16, %v194_v13 }
  0x44   :  { %v207_v18 = vmul.f32 %v203_v17, %v195_v15 }
  0x7a   :  { %v211_v11 = vpop.permute.xlu0 %210 }
  0x7b   :  { %v215_v19 = vperm.slane %v211_v11, %v214_v12 }
  0x7d   :  { %v217_v20 = vmul.f32 %v215_v19, %v206_v10  ;;  %v218_v21 = vmul.f32 %v215_v19, %v207_v18 }
  0x82   :  { %v222_v14 = vpop.permute.xlu0 %221 }
  0x83   :  { %v226_v22 = vperm.slane %v222_v14, %v214_v12 }
  0x85   :  { %v228_v3 = vadd.f32 %v226_v22, %v217_v20  ;;  %v229_v23 = vadd.f32 %v226_v22, %v218_v21 }
  0x87   :  { %230 = vst [vmem:[#allocation5] sm:$0xff] %v228_v3 }
  0x88   :  { %231 = vst [vmem:[#allocation5 + $0x8] sm:$0xff] %v229_v23 }
  0x89   :  { %244 = dma.vmem_to_hbm [thread:$0]  %s237_s2, 256, %s239_s24, [#allocation4], %s319_s17, %s319_s17, %s320_s18  }
  0x8a   :  { %316 = dma.done.wait [#allocation4], 256  }
  0x8b   :  { %317 = vsyncadd [#allocation4], 4294967040 }
  0x8c   :  { %249 = vsyncpa [#allocation3], 1 }
  0x8d   :  { %250 = vsyncpa [#allocation4], 1 }

</bundles_post_ra>
